<compile_context>
chip_gen: v5e
topology: v5e:2x2
jax: 0.10.0
libtpu: 0.0.40
codegen_flags: <defaults>
</compile_context>

<pallas_src>
from functools import partial

import jax
import jax.numpy as jnp
from jax.experimental import pallas as pl
from jax.experimental.pallas import tpu as pltpu


# dot_general dimension numbers contracting the lane (pixel) axis of both
# operands — the "A @ B.T" form the MXU handles natively (same as q @ k.T).
_NT_DIMS = (((1,), (1,)), ((), ()))


def _wce_stats_kernel(x_ref, t_ref, out_ref, acc_ref, *,
                      tp, tps, hw, ignore_index, ragged):
    """Accumulate per-class [denom, ., ., ., nll_sum, count] for one (image, split)."""
    i = pl.program_id(2)

    @pl.when(i == 0)
    def _():
        acc_ref[...] = jnp.zeros_like(acc_ref)

    x = x_ref[...].astype(jnp.float32)            # (C, TP) logits, f32 internal math
    t = t_ref[...]                                # (1, TP) int32 targets
    c_dim = x.shape[0]

    nig = t != ignore_index                       # (1, TP)
    if ragged:
        # Lanes past this image's real pixel count (or past the last real tile
        # on an uneven split) hold garbage, possibly NaN/Inf.  Sanitize x with a
        # select so everything downstream is finite, and drop those lanes.
        s = pl.program_id(1)
        lane = jax.lax.broadcasted_iota(jnp.int32, (1, tp), 1)
        valid = (s * tps + i) * tp + lane < hw    # (1, TP) bool, unclamped index
        x = jnp.where(valid, x, 0.0)
        keep = nig & valid
    else:
        keep = nig

    # Softmax / log-sum-exp over the class (sublane) axis.
    m = jnp.max(x, axis=0, keepdims=True)         # (1, TP)
    e = jnp.exp(x - m)                            # (C, TP)
    se = jnp.sum(e, axis=0, keepdims=True)        # (1, TP)
    inv_se = pl.reciprocal(se)                    # exact (EUP); keeps f32 parity
    lse = m + jnp.log(se)                         # (1, TP)
    if ragged:
        inv_se = jnp.where(valid, inv_se, 0.0)    # (1,TP)-wide mask, not (C,TP)

    # One-hot of the target along the class axis (ignore_index never matches iota).
    cls = jax.lax.broadcasted_iota(jnp.int32, (c_dim, tp), 0)
    onehot = cls == t                             # (C, TP)
    onehot_f = onehot.astype(jnp.float32)
    xt = jnp.sum(jnp.where(onehot, x, 0.0), axis=0, keepdims=True)   # x[target_i]
    nll = jnp.where(keep, lse - xt, 0.0)          # (1, TP), masked at (1,TP) width
    keep_f = keep.astype(jnp.float32)

    # Offload the three per-class pixel reductions to the idle MXU:
    #   e        @ rhs.T -> col 0 = denom[c]   (cols 1,2 unused)
    #   onehot_f @ rhs.T -> col 1 = nll_sum[c], col 2 = count[c]  (col 0 unused)
    # Masking happened via where() on the (1, TP) rows of rhs / on x above, so
    # garbage lanes contribute exact zeros to the contractions.
    rhs = jnp.concatenate([inv_se, nll, keep_f], axis=0)             # (3, TP)
    r1 = jax.lax.dot_general(e, rhs, _NT_DIMS,
                             preferred_element_type=jnp.float32)     # (C, 3)
    r2 = jax.lax.dot_general(onehot_f, rhs, _NT_DIMS,
                             preferred_element_type=jnp.float32)     # (C, 3)
    acc_ref[...] += jnp.concatenate([r1, r2], axis=1)                # (C, 6)

    @pl.when(i == pl.num_programs(2) - 1)
    def _():
        out_ref[...] = acc_ref[...]


def _vmem_limits():
    """Generation-aware (vmem_limit_bytes, tile-sizing budget)."""
    cap = 128 * 1024 * 1024                       # v5e/v6e physical VMEM per core
    try:
        cap = int(pltpu.get_tpu_info().vmem_capacity_bytes)
    except Exception:
        pass                                      # query unavailable: keep default
    # v5e/v6e (128 MiB): 48 MiB scoped limit; v7x (64 MiB/TC): 32 MiB, leaving
    # headroom for double-buffered input blocks + outputs.
    limit = int(min(48 * 1024 * 1024, cap // 2))
    return limit, limit // 2


def _pick_tp(c, hw, x_itemsize, budget_bytes):
    """Largest 128-aligned pixel tile within the VMEM budget (capped at 8192 lanes).

    Accounts for sublane padding: the logits block pads C to the dtype sublane
    multiple, the (1, TP) int32 target block occupies 8 sublanes, and ~6 f32
    (C_pad, TP)-sized temporaries are live in the body.  Measured tiling data
    reaches ~85% of HBM roofline by 512-1024 lanes, so >8K-lane tiles only add
    intermediate-materialization / spill risk (worst on v7x's 64 MiB/TC).
    """
    sub_in = max(1, (8 * 4) // x_itemsize)        # 8 for f32, 16 for bf16
    c_in = -(-c // sub_in) * sub_in
    c_f32 = -(-c // 8) * 8
    per_lane = 2 * (c_in * x_itemsize + 8 * 4) + 6 * c_f32 * 4
    tp = (budget_bytes // max(per_lane, 1)) // 128 * 128
    hw_r = -(-hw // 128) * 128
    return int(max(128, min(tp, 8192, hw_r)))


def weighted_cross_entropy_loss(logits, target, ignore_index=-1,
                                tp=None, num_splits=None):
    """logits: (N, C, H, W) float (f32 or bf16 — keep bf16 end-to-end, the kernel
    upcasts per tile); target: (N, H, W) int.  Returns the scalar WCE loss."""
    n, c, h, w = logits.shape
    hw = h * w

    # Free, contiguous reshapes only — no transpose, no dtype cast, no pad.
    x = logits.reshape(n, c, hw)
    t = target.reshape(n, 1, hw).astype(jnp.int32)

    vmem_limit, vmem_budget = _vmem_limits()
    if tp is None:
        tp = _pick_tp(c, hw, jnp.dtype(logits.dtype).itemsize, vmem_budget)
    num_tiles = pl.cdiv(hw, tp)

    if num_splits is None:
        # Split the pixel-tile axis so both TensorCores (v7x megacore) get work
        # when the batch axis alone cannot balance them (N == 1 / odd N).  The
        # split costs at most one redundant masked tile per image, so only take
        # it when that waste is small; on single-TC chips it is a near no-op.
        num_splits = 1
        if n % 2 == 1 and num_tiles >= 2 and (num_tiles % 2 == 0 or num_tiles >= 6):
            num_splits = 2
    num_splits = max(1, min(int(num_splits), num_tiles))
    tps = pl.cdiv(num_tiles, num_splits)
    need_clamp = num_splits * tps > num_tiles
    ragged = need_clamp or (hw % tp != 0)
    last_tile = num_tiles - 1

    def pix_map(b, s, i):
        pt = s * tps + i
        if need_clamp:
            # Overflow steps of an uneven split re-read the (in-bounds) last
            # tile; the kernel masks them out via the unclamped pixel index.
            pt = jnp.minimum(pt, last_tile)
        return (b, 0, pt)

    cost = pl.CostEstimate(
        flops=16 * n * hw * c,
        transcendentals=(c + 2) * n * hw,
        bytes_accessed=n * hw * (c * jnp.dtype(logits.dtype).itemsize + 4)
        + n * num_splits * c * 6 * 4,
    )

    stats = pl.pallas_call(
        partial(_wce_stats_kernel, tp=tp, tps=tps, hw=hw,
                ignore_index=ignore_index, ragged=ragged),
        out_shape=jax.ShapeDtypeStruct((n, num_splits, c, 6), jnp.float32),
        grid_spec=pltpu.PrefetchScalarGridSpec(
            num_scalar_prefetch=0,
            grid=(n, num_splits, tps),
            in_specs=[
                pl.BlockSpec((None, c, tp), pix_map),
                pl.BlockSpec((None, 1, tp), pix_map),
            ],
            out_specs=pl.BlockSpec((None, None, c, 6),
                                   lambda b, s, i: (b, s, 0, 0)),
            scratch_shapes=[pltpu.VMEM((c, 6), jnp.float32)],  # single accumulator
        ),
        compiler_params=pltpu.CompilerParams(
            # (image, split) axes parallel -> megacore sharding; the pixel-tile
            # axis is a sequential reduction into the VMEM accumulator.
            dimension_semantics=("parallel", "parallel", "arbitrary"),
            vmem_limit_bytes=vmem_limit,
        ),
        cost_estimate=cost,
    )(x, t)

    # Tiny final combination in plain JAX: global per-class sums over images/splits.
    denom = jnp.sum(stats[..., 0], axis=(0, 1))
    nll_sum = jnp.sum(stats[..., 4], axis=(0, 1))
    count = jnp.sum(stats[..., 5], axis=(0, 1))

    p_total = jnp.float32(n * hw)
    # class_weights = (1 - p).sum(-1) / p.sum(-1) = (P - denom) / denom
    weight = (p_total - denom) / denom
    # F.cross_entropy(..., weight=w, reduction='mean'): weighted mean over non-ignored.
    return jnp.dot(weight, nll_sum) / jnp.dot(weight, count)


def _reference(logits, target, ignore_index=-1):
    """Pure-JAX mirror of the PyTorch module, for verification."""
    n, c, h, w = logits.shape
    probs = jax.nn.softmax(logits, axis=1)
    flat = jnp.transpose(probs, (1, 0, 2, 3)).reshape(c, -1)
    weight = (1.0 - flat).sum(-1) / flat.sum(-1)

    logp = jax.nn.log_softmax(logits, axis=1)
    lp = jnp.transpose(logp, (1, 0, 2, 3)).reshape(c, -1)
    t = target.reshape(-1)
    valid = t != ignore_index
    tc = jnp.where(valid, t, 0)
    nll = -lp[tc, jnp.arange(t.shape[0])]
    wpix = weight[tc] * valid.astype(jnp.float32)
    return jnp.sum(wpix * nll) / jnp.sum(wpix)


if __name__ == "__main__":
    key = jax.random.PRNGKey(0)

    def check(n, c, h, w, dtype, tol, **kw):
        k1, k2 = jax.random.split(jax.random.fold_in(key, n * 1000 + h * 10 + w))
        x = jax.random.normal(k1, (n, c, h, w), dtype=jnp.float32).astype(dtype)
        t = jax.random.randint(k2, (n, h, w), 0, c, dtype=jnp.int32)
        t = t.at[0, 0, : max(1, w // 4)].set(-1)      # sprinkle ignored pixels
        loss = jax.block_until_ready(
            weighted_cross_entropy_loss(x, t, ignore_index=-1, **kw))
        ref = _reference(x.astype(jnp.float32), t, ignore_index=-1)
        assert jnp.isfinite(loss), ("non-finite loss", loss)
        assert jnp.allclose(loss, ref, rtol=tol, atol=tol), (dtype, loss, ref)

    # Baseline parity: single full pixel tile, even batch (no split).
    check(2, 4, 16, 16, jnp.float32, 1e-4)
    # Ragged last tile + dual-TC pixel split at N=1 (even tile count, no clamp).
    check(1, 5, 16, 25, jnp.float32, 1e-4, tp=128, num_splits=2)
    # bf16 logits + uneven split (clamped overflow tile path).
    check(1, 4, 16, 51, jnp.bfloat16, 1e-3, tp=128, num_splits=2)

    print("KERNEL_OK")
</pallas_src>

<mosaic_0001>
module attributes {stable_mosaic.version = 11 : i64} {
  func.func @_wce_stats_kernel(%arg0: i32, %arg1: i32, %arg2: i32, %arg3: memref<1x4x256xf32, #tpu.memory_space<vmem>>, %arg4: memref<1x1x256xi32, #tpu.memory_space<vmem>>, %arg5: memref<1x1x4x6xf32, #tpu.memory_space<vmem>>, %arg6: memref<4x6xf32, #tpu.memory_space<vmem>>) attributes {dimension_semantics = [#tpu.dimension_semantics<parallel>, #tpu.dimension_semantics<parallel>, #tpu.dimension_semantics<arbitrary>], iteration_bounds = array<i64: 2, 1, 1>, scalar_prefetch = 0 : i64, scratch_operands = 1 : i64, tpu.core_type = #tpu.core_type<tc>, window_params = [{transform_indices = @transform_0, window_bounds = array<i64: 1, 4, 256>}, {transform_indices = @transform_1, window_bounds = array<i64: 1, 1, 256>}, {transform_indices = @transform_2, window_bounds = array<i64: 1, 1, 4, 6>}]} {
    %c0_i32 = arith.constant 0 : i32
    %0 = arith.cmpi eq, %arg2, %c0_i32 : i32
    %1 = arith.extui %0 : i1 to i32
    %c0_i32_0 = arith.constant 0 : i32
    %2 = arith.cmpi ne, %1, %c0_i32_0 : i32
    scf.if %2 {
      %cst_18 = arith.constant 0.000000e+00 : f32
      %43 = vector.broadcast %cst_18 : f32 to vector<4x6xf32>
      %c0_19 = arith.constant 0 : index
      %c0_20 = arith.constant 0 : index
      %44 = vector.load %arg6[%c0_19, %c0_20] : memref<4x6xf32, #tpu.memory_space<vmem>>, vector<4x6xf32>
      tpu.vector_store %arg6[%c0_19, %c0_20], %43 {strides = array<i32>} : memref<4x6xf32, #tpu.memory_space<vmem>>, vector<4x6xf32>,
    } else {
    }
    %c0 = arith.constant 0 : index
    %c0_1 = arith.constant 0 : index
    %c0_2 = arith.constant 0 : index
    %3 = vector.load %arg3[%c0, %c0_1, %c0_2] : memref<1x4x256xf32, #tpu.memory_space<vmem>>, vector<1x4x256xf32>
    %4 = vector.shape_cast %3 : vector<1x4x256xf32> to vector<4x256xf32>
    %c0_3 = arith.constant 0 : index
    %c0_4 = arith.constant 0 : index
    %c0_5 = arith.constant 0 : index
    %5 = vector.load %arg4[%c0_3, %c0_4, %c0_5] : memref<1x1x256xi32, #tpu.memory_space<vmem>>, vector<1x1x256xi32>
    %6 = vector.shape_cast %5 : vector<1x1x256xi32> to vector<1x256xi32>
    %c-1_i32 = arith.constant -1 : i32
    %7 = vector.broadcast %c-1_i32 : i32 to vector<1x256xi32>
    %8 = arith.cmpi ne, %6, %7 : vector<1x256xi32>
    %cst = arith.constant dense<0xFF800000> : vector<256xf32>
    %9 = vector.multi_reduction <maximumf>, %4, %cst [0] : vector<4x256xf32> to vector<256xf32>
    %10 = vector.shape_cast %9 : vector<256xf32> to vector<1x256xf32>
    %11 = vector.broadcast %10 : vector<1x256xf32> to vector<4x256xf32>
    %12 = arith.subf %4, %11 : vector<4x256xf32>
    %13 = math.exp %12 : vector<4x256xf32>
    %cst_6 = arith.constant dense<0.000000e+00> : vector<256xf32>
    %14 = vector.multi_reduction <add>, %13, %cst_6 [0] : vector<4x256xf32> to vector<256xf32>
    %15 = vector.shape_cast %14 : vector<256xf32> to vector<1x256xf32>
    %16 = tpu.reciprocal %15 : vector<1x256xf32> -> vector<1x256xf32>
    %17 = math.log %15 : vector<1x256xf32>
    %18 = arith.addf %10, %17 : vector<1x256xf32>
    %19 = tpu.iota {dimensions = array<i32: 0>} : vector<4x256xi32>
    %20 = vector.broadcast %6 : vector<1x256xi32> to vector<4x256xi32>
    %21 = arith.cmpi eq, %19, %20 : vector<4x256xi32>
    %22 = arith.extui %21 : vector<4x256xi1> to vector<4x256xi32>
    %23 = arith.sitofp %22 : vector<4x256xi32> to vector<4x256xf32>
    %cst_7 = arith.constant 0.000000e+00 : f32
    %24 = vector.broadcast %cst_7 : f32 to vector<4x256xf32>
    %25 = arith.select %21, %4, %24 : vector<4x256xi1>, vector<4x256xf32>
    %cst_8 = arith.constant dense<0.000000e+00> : vector<256xf32>
    %26 = vector.multi_reduction <add>, %25, %cst_8 [0] : vector<4x256xf32> to vector<256xf32>
    %27 = vector.shape_cast %26 : vector<256xf32> to vector<1x256xf32>
    %28 = arith.subf %18, %27 : vector<1x256xf32>
    %cst_9 = arith.constant 0.000000e+00 : f32
    %29 = vector.broadcast %cst_9 : f32 to vector<1x256xf32>
    %30 = arith.select %8, %28, %29 : vector<1x256xi1>, vector<1x256xf32>
    %31 = arith.extui %8 : vector<1x256xi1> to vector<1x256xi32>
    %32 = arith.sitofp %31 : vector<1x256xi32> to vector<1x256xf32>
    %33 = tpu.concatenate %16, %30, %32 in 0 : vector<1x256xf32>, vector<1x256xf32>, vector<1x256xf32> -> vector<3x256xf32>
    %cst_10 = arith.constant dense<0.000000e+00> : vector<4x3xf32>
    %34 = tpu.matmul %13, %33, %cst_10 {dimension_numbers = #tpu.dot_dimension_numbers<[1], [1], [0], [0], [0, 0, 1, 0], [], []>} : vector<4x256xf32>, vector<3x256xf32>, vector<4x3xf32> -> vector<4x3xf32>
    %cst_11 = arith.constant dense<0.000000e+00> : vector<4x3xf32>
    %35 = tpu.matmul %23, %33, %cst_11 {dimension_numbers = #tpu.dot_dimension_numbers<[1], [1], [0], [0], [0, 0, 1, 0], [], []>} : vector<4x256xf32>, vector<3x256xf32>, vector<4x3xf32> -> vector<4x3xf32>
    %c0_12 = arith.constant 0 : index
    %c0_13 = arith.constant 0 : index
    %36 = vector.load %arg6[%c0_12, %c0_13] : memref<4x6xf32, #tpu.memory_space<vmem>>, vector<4x6xf32>
    %37 = tpu.concatenate %34, %35 in 1 : vector<4x3xf32>, vector<4x3xf32> -> vector<4x6xf32>
    %38 = arith.addf %36, %37 : vector<4x6xf32>
    %c0_14 = arith.constant 0 : index
    %c0_15 = arith.constant 0 : index
    %39 = vector.load %arg6[%c0_14, %c0_15] : memref<4x6xf32, #tpu.memory_space<vmem>>, vector<4x6xf32>
    tpu.vector_store %arg6[%c0_14, %c0_15], %38 {strides = array<i32>} : memref<4x6xf32, #tpu.memory_space<vmem>>, vector<4x6xf32>,
    %c0_i32_16 = arith.constant 0 : i32
    %40 = arith.cmpi eq, %arg2, %c0_i32_16 : i32
    %41 = arith.extui %40 : i1 to i32
    %c0_i32_17 = arith.constant 0 : i32
    %42 = arith.cmpi ne, %41, %c0_i32_17 : i32
    scf.if %42 {
      %c0_18 = arith.constant 0 : index
      %c0_19 = arith.constant 0 : index
      %43 = vector.load %arg6[%c0_18, %c0_19] : memref<4x6xf32, #tpu.memory_space<vmem>>, vector<4x6xf32>
      %c0_20 = arith.constant 0 : index
      %c0_21 = arith.constant 0 : index
      %c0_22 = arith.constant 0 : index
      %c0_23 = arith.constant 0 : index
      %44 = vector.load %arg5[%c0_20, %c0_21, %c0_22, %c0_23] : memref<1x1x4x6xf32, #tpu.memory_space<vmem>>, vector<1x1x4x6xf32>
      %45 = vector.shape_cast %44 : vector<1x1x4x6xf32> to vector<4x6xf32>
      %46 = vector.shape_cast %43 : vector<4x6xf32> to vector<1x1x4x6xf32>
      tpu.vector_store %arg5[%c0_20, %c0_21, %c0_22, %c0_23], %46 {strides = array<i32>} : memref<1x1x4x6xf32, #tpu.memory_space<vmem>>, vector<1x1x4x6xf32>,
    } else {
    }
    return
  }
  func.func @transform_0(%arg0: i32, %arg1: i32, %arg2: i32) -> (i32, i32, i32) {
    %c1_i32 = arith.constant 1 : i32
    %0 = arith.muli %arg1, %c1_i32 : i32
    %1 = arith.addi %0, %arg2 : i32
    %c0_i32 = arith.constant 0 : i32
    %c0_i32_0 = arith.constant 0 : i32
    return %arg0, %c0_i32, %1 : i32, i32, i32
  }
  func.func @transform_1(%arg0: i32, %arg1: i32, %arg2: i32) -> (i32, i32, i32) {
    %c1_i32 = arith.constant 1 : i32
    %0 = arith.muli %arg1, %c1_i32 : i32
    %1 = arith.addi %0, %arg2 : i32
    %c0_i32 = arith.constant 0 : i32
    %c0_i32_0 = arith.constant 0 : i32
    return %arg0, %c0_i32, %1 : i32, i32, i32
  }
  func.func @transform_2(%arg0: i32, %arg1: i32, %arg2: i32) -> (i32, i32, i32, i32) {
    %c0_i32 = arith.constant 0 : i32
    %c0_i32_0 = arith.constant 0 : i32
    %c0_i32_1 = arith.constant 0 : i32
    return %arg0, %arg1, %c0_i32, %c0_i32_0 : i32, i32, i32, i32
  }
}

</mosaic_0001>

<bundles_post_ra>
// kernel: tpu_custom_call.1
= control target key start
LH: loop header
LB: loop body
LE: loop exit
PB: predicated region body
PF: predicated region fallthrough
CT: control target
= control target key end

     0   :  { %7 = vsyncpa [#allocation4], 0  ;;  %s1085_s0 = inlined_call_operand.hbm [shape: f32[2,4,256], index: 0, kind: input, shape index: {}]   ;;  %s1086_s1 = inlined_call_operand.hbm [shape: s32[2,1,256], index: 1, kind: input, shape index: {}]   ;;  %s1087_s2 = inlined_call_operand.hbm [shape: f32[2,1,4,6], index: 2, kind: output, shape index: {}]  }
   0x1   :  { %9 = vsyncpa [#allocation4 + $0x1], 0 }
   0x2   :  { %10 = vsyncpa [#allocation7], 0 }
   0x3   :  { %12 = vsyncpa [#allocation7 + $0x1], 0 }
   0x4   :  { %13 = vsyncpa [#allocation5], 0 }
   0x5   :  { %15 = vsyncpa [#allocation5 + $0x1], 0  ;;  %s887_s9 = smov 0   ;;  %s889_s10 = smov 0  }
   0x6   :  { %s891_s11 = smov 0   ;;  %s893_s12 = smov 0  }
   0x7   :  { %s895_s13 = smov 0   ;;  %s897_s14 = smov 0  }
   0x8 LB: > { %s618_s15 = sadd.s32 4294967295, %s867_s14   ;;  %s619_s16 = sadd.s32 4294967294, %s867_s14   ;;  %s867_s14 = sphi %s897_s14, %s21_s14   ;;  %s863_s13 = sphi %s895_s13, %s1103_s13   ;;  %s859_s12 = sphi %s893_s12, %s1102_s12   ;;  %s855_s11 = sphi %s891_s11, %s1101_s11   ;;  %s851_s10 = sphi %s889_s10, %s1100_s10   ;;  %s847_s9 = sphi %s887_s9, %s1099_s9  }
   0x9   : > { %s40_s17 = sadd.s32 1, %s863_s13  ;;  %s51_s18 = sadd.s32 1, %s855_s11 }
   0xa   : > { %p42_p0 = scmp.ge.s32.totalorder %s40_s17, 2  ;;  %p58_p1 = scmp.ne.s32.totalorder %s855_s11, %s851_s10 }
   0xb   : > { %p59_p2 = scmp.eq.s32.totalorder %s867_s14, 0  ;;  %p64_p3 = scmp.ne.s32.totalorder %s851_s10, %s847_s9 }
   0xc   : > { %s1105_s17 = smov (%p42_p0, %s40_s17), 0  ;;  %p65_p5 = scmp.eq.s32.totalorder %s618_s15, 0 }
   0xd   : > { %p928_p4 = por %p59_p2, %p58_p1  ;;  %s46_s20 = ssub.s32 %s863_s13, %s1105_s17 }
   0xe   : > { %p120_p6 = scmp.eq.s32.totalorder %s618_s15, 1  ;;  %p49_p7 = scmp.eq.s32.totalorder %s46_s20, 0 }
   0xf   : > { %p934_p8 = por %p65_p5, %p64_p3  ;;  %p126_p10 = scmp.eq.s32.totalorder %s619_s16, 1 }
  0x10   : > { %p938_p9 = por %p120_p6, %p58_p1  ;;  %p621_p12 = scmp.ge.s32.totalorder %s867_s14, 2 }
  0x11   : > { %s943_s23 = scalar_select %p49_p7, %s855_s11, %s51_s18  }
  0x12   : > { %p945_p11 = por %p126_p10, %p64_p3  ;;  %p658_p13 = scmp.lt.s32.totalorder %s867_s14, 2 }
  0x13   : > { %s146_s25 = sand.u32 1, %s855_s11   ;;  %s640_s27 = sshll.u32 %s863_s13, 3 }
  0x14   : > { %s622_s26 = sshll.u32 %s146_s25, 3  ;;  %s158_s30 = scalar_lea.hbm %s1085_s0, %s640_s27 }
  0x15   : > { %s150_s3 = scalar_lea.vmem [#allocation3], %s622_s26  ;;  %s160_s5 = sshll.u32 %s158_s30, 4  ;;  %s161_s5 = int_to_ptr.hbm [resolvable:$true] %s160_s5 }
  0x16   : > { %s162_s4 = sshll.u32 %s150_s3, 4  ;;  %p958_p0 = pnand %p658_p13, %p928_p4  ;;  %s163_s4 = int_to_ptr.vmem [resolvable:$true] %s162_s4 }
  0x17   : > { %p627_p1 = scmp.ge.s32.totalorder %s867_s14, 1  ;;  %p189_p2 = scmp.lt.s32.totalorder %s867_s14, 3 }
  0x18   : > { %s147_s7 = scalar_lea.sflag [#allocation4], %s146_s25  ;;  %s625_s8 = sshll.u32 %s146_s25, 1 }
  0x19   : > { %650 = dma.hbm_to_vmem [thread:$0]  (!%p958_p0), %s161_s5, 128, %s163_s4, %s147_s7  }
  0x1a   : > { %p190_p3 = pnand %p627_p1, %p189_p2  ;;  %s626_s15 = sshll.u32 %s863_s13, 1 }
  0x1b   : > { %s180_s20 = scalar_lea.hbm %s1086_s1, %s626_s15  ;;  %s173_s26 = scalar_lea.vmem [#allocation6], %s625_s8 }
  0x1c   : > { %s184_s19 = sshll.u32 %s173_s26, 4  ;;  %s182_s27 = sshll.u32 %s180_s20, 4  ;;  %s185_s19 = int_to_ptr.vmem [resolvable:$true] %s184_s19  ;;  %s183_s27 = int_to_ptr.hbm [resolvable:$true] %s182_s27 }
  0x1d   : > { %s170_s28 = scalar_lea.sflag [#allocation7], %s146_s25  ;;  %193 = sbr.rel (%p190_p3) target bundleno = 385 (0x181), region = 28 }
  0x1e   : > { %653 = dma.hbm_to_vmem [thread:$0]  (!%p958_p0), %s183_s27, 32, %s185_s19, %s170_s28  }
  0x1f   : > { %s973_s29 = sand.u32 (!%p190_p3), 1, %s851_s10  }
  0x20   : > { %s628_s30 = sshll.u32 (!%p190_p3), %s973_s29, 3  ;;  %s196_s3 = scalar_lea.sflag (!%p190_p3), [#allocation4], %s973_s29 }
  0x21   : > { %s199_s4 = scalar_lea.vmem (!%p190_p3), [#allocation3], %s628_s30 }
  0x22   : > { %834 = dma.done.wait (%p934_p8), %s196_s3, 128  }
  0x23   : > { %836 = vsyncadd (%p934_p8), %s196_s3, 4294967168  ;;  %s629_s25 = sshll.u32 %s973_s29, 1  ;;  %s206_s5 = scalar_lea.sflag [#allocation7], %s973_s29 }
  0x24   : > { %s983_s6 = scalar_lea.vmem [#allocation6], %s629_s25 }
  0x25   : > { %838 = dma.done.wait (%p934_p8), %s206_s5, 32  }
  0x26   : > { %840 = vsyncadd (%p934_p8), %s206_s5, 4294967264  ;;  %vm244_vm0 = vcmask 44032   ;;  %v869_v0 = vmov 0.0   ;;  %v246_v1 = vld [vmem:[%s199_s4] sm:$0xff]  ;;  %vm255_vm1 = vcmask 1043456   ;;  %v332_v23 = vlaneseq  ;;  %s871_s21 = smov 3  }
  0x27   : > { %245 = vst.msk [vmem:[#allocation2] sm:$0xf] %vm244_vm0, %v869_v0  ;;  %v1001_v24 = vld [vmem:[%s983_s6] sm:$0x3]  ;;  %vm368_vm10 = vcmask 1040384   ;;  %vm386_vm14 = vcmask 1041408  }
  0x28   : > { %250 = vst [vmem:[#allocation1] ss:$2 sm:$0xff] %v246_v1  ;;  %v333_v29 = vshrl.u32 %v332_v23, 7  ;;  %v334_v32 = vperm.slane %v1001_v24, 0  ;;  %v335_v33 = vperm.slane %v1001_v24, 1  ;;  %vm248_vm6 = vcmp.ne.s32.totalorder %v1001_v24, 4294967295 }
  0x29   : > { %v870_v24 = vmov 1.0   ;;  %vm479_vm15 = vcmask 23552   ;;  %s630_s7 = sshll.u32 %s973_s29, 2  ;;  %s637_s8 = sshll.u32 %s859_s12, 2 }
  0x2a   : > { %vm1007_vm2 = vcmp.eq.s32.totalorder %v333_v29, %v334_v32  ;;  %vm1011_vm3 = vcmp.eq.s32.totalorder %v333_v29, %v335_v33  ;;  %s501_s18 = scalar_lea.hbm %s1087_s2, %s637_s8  ;;  %s235_s20 = scalar_lea.vmem [#allocation8], %s630_s7 }
  0x2b   : > { %s503_s26 = sshll.u32 %s235_s20, 4  ;;  %s505_s19 = sshll.u32 %s501_s18, 4  ;;  %s504_s26 = int_to_ptr.vmem [resolvable:$true] %s503_s26  ;;  %s506_s19 = int_to_ptr.hbm [resolvable:$true] %s505_s19 }
  0x2c   : > { %s490_s27 = scalar_lea.sflag [#allocation5], %s973_s29  ;;  %s795_s28 = sshra.s32 %s506_s19, 4  ;;  %s796_s28 = int_to_ptr.hbm [resolvable:$true] %s795_s28 }
  0x2d   : > { %s797_s12 = scalar_lea.hbm %s796_s28, 4  ;;  %s801_s4 = scalar_lea.hbm %s1087_s2, 8 }
  0x2e   : > { %p798_p4 = scmp.ne.s32.totalorder %s796_s28, %s797_s12  ;;  %p802_p7 = scmp.lt.s32.totalorder %s796_s28, %s1087_s2 }
  0x2f   : > { %v251_v2 = vld.sshfl [vmem:[#allocation1] sm:$0xff pattern:$0x75316420]  ;;  %v252_v3 = vld.sshfl [vmem:[#allocation1 + $0x8] sm:$0xff pattern:$0x75316420]  ;;  %p803_p8 = scmp.lt.s32.totalorder %s801_s4, %s797_s12 }
  0x30   : > { %v256_v4 = vsel %vm255_vm1, %v251_v2, -inf  ;;  %v263_v5 = vsel %vm255_vm1, %v252_v3, -inf  ;;  %p799_p5 = pnand %p798_p4, %p938_p9 }
  0x31   : > { %v257_v6 = vrot.slane %v256_v4, 4  ;;  %v264_v7 = vrot.slane %v263_v5, 4  ;;  %p804_p10 = por %p803_p8, %p802_p7 }
  0x32   : > { %p800_p6 = pneg %p799_p5 }
  0x33   : > { %v258_v8 = vmax.f32 %v256_v4, %v257_v6  ;;  %v265_v9 = vmax.f32 %v263_v5, %v264_v7 }
  0x34   : > { %p805_p13 = pnand %p804_p10, %p800_p6 }
  0x35   : > { %v259_v10 = vrot.slane %v258_v8, 2  ;;  %v266_v11 = vrot.slane %v265_v9, 2 }
  0x37   : > { %v260_v12 = vmax.f32 %v258_v8, %v259_v10  ;;  %v267_v13 = vmax.f32 %v265_v9, %v266_v11 }
  0x39   : > { %v261_v14 = vrot.slane %v260_v12, 1  ;;  %v268_v15 = vrot.slane %v267_v13, 1 }
  0x3b   : > { %v993_v16 = vmax.f32 %v260_v12, %v261_v14  ;;  %v995_v17 = vmax.f32 %v267_v13, %v268_v15 }
  0x3d   : > { %v272_v18 = vrot.slane %v995_v17, 4 }
  0x3f   : > { %v273_v19 = vsel %vm255_vm1, %v993_v16, %v272_v18 }
  0x40   : > { %v275_v20 = vsub.f32 %v246_v1, %v273_v19 }
  0x42   : > { %v276_v21 = vmul.f32 1.442695, %v275_v20 }
  0x44   : > { %711 = vpow2.f32 %v276_v21 }
  0x4a   : > { %v712_v22 = vpop.eup %711 }
  0x4b   : > { %279 = vst [vmem:[#allocation1] ss:$2 sm:$0xff] %v712_v22 }
  0x52   : > { %v280_v25 = vld.sshfl [vmem:[#allocation1] sm:$0xff pattern:$0x75316420]  ;;  %v281_v26 = vld.sshfl [vmem:[#allocation1 + $0x8] sm:$0xff pattern:$0x75316420] }
  0x53   : > { %v284_v27 = vsel %vm255_vm1, %v280_v25, 0.0  ;;  %v291_v28 = vsel %vm255_vm1, %v281_v26, 0.0  ;;  %342 = vst [vmem:[#allocation1] ss:$2 sm:$0xff] %v246_v1 }
  0x54   : > { %v285_v30 = vrot.slane %v284_v27, 4  ;;  %v292_v31 = vrot.slane %v291_v28, 4 }
  0x56   : > { %v286_v34 = vadd.f32 %v285_v30, %v284_v27  ;;  %v293_v35 = vadd.f32 %v292_v31, %v291_v28 }
  0x58   : > { %v287_v36 = vrot.slane %v286_v34, 2  ;;  %v294_v37 = vrot.slane %v293_v35, 2 }
  0x5a   : > { %v288_v40 = vadd.f32 %v287_v36, %v286_v34  ;;  %v295_v41 = vadd.f32 %v294_v37, %v293_v35  ;;  %v343_v42 = vld.sshfl [vmem:[#allocation1] sm:$0xff pattern:$0x75316420]  ;;  %v344_v43 = vld.sshfl [vmem:[#allocation1 + $0x8] sm:$0xff pattern:$0x75316420] }
  0x5b   : > { %v347_v44 = vsel %vm1007_vm2, %v343_v42, 0.0  ;;  %v348_v45 = vsel %vm1011_vm3, %v344_v43, 0.0  ;;  %389 = vst [vmem:[#allocation1] ss:$2 sm:$0xff] %v712_v22 }
  0x5c   : > { %v289_v46 = vrot.slane %v288_v40, 1  ;;  %v296_v47 = vrot.slane %v295_v41, 1  ;;  %v349_v48 = vsel %vm255_vm1, %v347_v44, 0.0  ;;  %v356_v49 = vsel %vm255_vm1, %v348_v45, 0.0 }
  0x5d   : > { %v350_v50 = vrot.slane %v349_v48, 4  ;;  %v357_v51 = vrot.slane %v356_v49, 4 }
  0x5e   : > { %v290_v52 = vadd.f32 %v289_v46, %v288_v40  ;;  %v297_v53 = vadd.f32 %v296_v47, %v295_v41 }
  0x5f   : > { %v351_v54 = vadd.f32 %v350_v50, %v349_v48  ;;  %v358_v55 = vadd.f32 %v357_v51, %v356_v49 }
  0x60   : > { %713 = vrcp.f32 %v290_v52  ;;  %vm303_vm4 = vweird.f32 %v290_v52  ;;  %v309_v9 = vand.u32 2147483648, %v290_v52  ;;  %v307_v13 = vand.u32 2147483647, %v290_v52 }
  0x61   : > { %715 = vlog2.f32 %v290_v52  ;;  %v352_v56 = vrot.slane %v351_v54, 2  ;;  %v359_v57 = vrot.slane %v358_v55, 2  ;;  %v323_v15 = vand.u32 2147483648, %v297_v53 }
  0x62   : > { %717 = vlog2.f32 %v297_v53  ;;  %vm317_vm8 = vweird.f32 %v297_v53  ;;  %v321_v20 = vand.u32 2147483647, %v297_v53  ;;  %vm308_vm11 = vcmp.eq.f32.partialorder %v307_v13, 8.507059e+37  ;;  %v390_v44 = vld.sshfl [vmem:[#allocation1] sm:$0xff pattern:$0x75316420] }
  0x63   : > { %v353_v58 = vadd.f32 %v352_v56, %v351_v54  ;;  %v360_v59 = vadd.f32 %v359_v57, %v358_v55  ;;  %719 = vrcp.f32 %v297_v53  ;;  %v324_v28 = vor.u32 1.1754944e-38, %v323_v15  ;;  %v391_v45 = vld.sshfl [vmem:[#allocation1 + $0x8] sm:$0xff pattern:$0x75316420] }
  0x64   : > { %vm322_vm13 = vcmp.eq.f32.partialorder %v321_v20, 8.507059e+37 }
  0x65   : > { %v354_v60 = vrot.slane %v353_v58, 1  ;;  %v361_v61 = vrot.slane %v360_v59, 1 }
  0x66   : > { %v714_v62 = vpop.eup %713 }
  0x67   : > { %v716_v63 = vpop.eup %715  ;;  %v299_v1 = vmul.f32 %v714_v62, %v290_v52  ;;  %vm304_vm5 = vweird.f32 %v714_v62  ;;  %v355_v7 = vadd.f32 %v354_v60, %v353_v58  ;;  %v362_v8 = vadd.f32 %v361_v61, %v360_v59  ;;  %v474_v52 = vld [vmem:[#allocation2] sm:$0xf] }
  0x68   : > { %v718_v2 = vpop.eup %717  ;;  %v327_v3 = vmul.f32 0.6931472, %v716_v63  ;;  %vm1026_vm7 = vmor %vm303_vm4, %vm304_vm5 }
  0x69   : > { %v720_v4 = vpop.eup %719  ;;  %v300_v5 = vsub.f32 1.0, %v299_v1  ;;  %v329_v6 = vmul.f32 0.6931472, %v718_v2 }
  0x6a   : > { %v330_v10 = vadd.f32 %v327_v3, %v993_v16  ;;  %v313_v11 = vmul.f32 %v720_v4, %v297_v53  ;;  %vm318_vm9 = vweird.f32 %v720_v4  ;;  %v310_v16 = vor.u32 1.1754944e-38, %v309_v9 }
  0x6b   : > { %v301_v12 = vmul.f32 %v714_v62, %v300_v5  ;;  %v331_v14 = vadd.f32 %v329_v6, %v995_v17  ;;  %v633_v17 = vsel %vm248_vm6, 1.0, %v869_v0  ;;  %vm319_vm12 = vmor %vm317_vm8, %vm318_vm9 }
  0x6c   : > { %v314_v19 = vsub.f32 1.0, %v313_v11  ;;  %v363_v22 = vsub.f32 %v330_v10, %v355_v7  ;;  %v380_v31 = vperm.slane %v633_v17, 0  ;;  %v381_v35 = vperm.slane %v633_v17, 1 }
  0x6d   : > { %v302_v21 = vadd.f32 %v714_v62, %v301_v12  ;;  %v364_v23 = vsub.f32 %v331_v14, %v362_v8 }
  0x6e   : > { %v315_v25 = vmul.f32 %v720_v4, %v314_v19 }
  0x6f   : > { %v306_v26 = vsel %vm1026_vm7, %v714_v62, %v302_v21  ;;  %v367_v27 = vrot.slane %v364_v23, 7 }
  0x70   : > { %v316_v29 = vadd.f32 %v720_v4, %v315_v25  ;;  %v311_v32 = vsel %vm308_vm11, %v310_v16, %v306_v26 }
  0x71   : > { %v369_v30 = vsel %vm368_vm10, %v363_v22, %v367_v27 }
  0x72   : > { %v371_v33 = vsel %vm248_vm6, %v369_v30, 0.0  ;;  %v320_v34 = vsel %vm319_vm12, %v720_v4, %v316_v29 }
  0x73   : > { %v375_v0 = vperm.slane %v371_v33, 0  ;;  %v325_v36 = vsel %vm322_vm13, %v324_v28, %v320_v34  ;;  %v376_v37 = vperm.slane %v371_v33, 1 }
  0x75   : > { %v384_v40 = vsel %vm368_vm10, %v311_v32, %v375_v0  ;;  %v385_v41 = vsel %vm368_vm10, %v325_v36, %v376_v37 }
  0x76   : > { %v387_v42 = vsel %vm386_vm14, %v384_v40, %v380_v31  ;;  %v388_v43 = vsel %vm386_vm14, %v385_v41, %v381_v35 }
  0x77   : > { %449 = vmatpush.xpose.msra.mxu2 %v387_v42  ;;  %469 = vmatpush.xpose.msra.mxu3 %v388_v43 }
  0x78   : > { %409 = vmatpush.xpose.msra.mxu0 %v387_v42  ;;  %429 = vmatpush.xpose.msra.mxu1 %v388_v43 }
  0x7a   : > { %634 = vmatmul.msk.f32.vlgmr.msra.gmra.mxu2 %vm1007_vm2, %v870_v24  ;;  %635 = vmatmul.msk.f32.vlgmr.msra.gmra.mxu3 %vm1011_vm3, %v870_v24 }
  0x7b   : > { %410 = vmatmul.f32.vlgmr.msra.gmra.mxu0 %v390_v44  ;;  %430 = vmatmul.f32.vlgmr.msra.gmra.mxu1 %v391_v45 }
  0xf8   : > { %v411_v49 = vpop.f32.mrf.mxu0  ;;  %v431_v50 = vpop.f32.mrf.mxu1 }
  0xf9   : > { %v432_v51 = vadd.f32 %v431_v50, %v411_v49 }
  0xfd   : > { %v451_v46 = vpop.f32.mrf.mxu2  ;;  %v471_v47 = vpop.f32.mrf.mxu3 }
  0xfe   : > { %v472_v48 = vadd.f32 %v471_v47, %v451_v46 }
 0x100   : > { %476 = vrot.lane.b32.xlu0 %v472_v48, %s871_s21 }
 0x172   : > { %v477_v38 = vpop.permute.xlu0 %476 }
 0x173   : > { %v480_v53 = vsel %vm479_vm15, %v432_v51, %v477_v38 }
 0x174   : > { %v481_v39 = vadd.f32 %v480_v53, %v474_v52 }
 0x176   : > { %483 = vst.msk [vmem:[#allocation2] sm:$0xf] %vm244_vm0, %v481_v39 }
 0x17d   : > { %v487_v54 = vld [vmem:[#allocation2] sm:$0xf] }
 0x17e   : > { %488 = vst.msk [vmem:[%s235_s20] sm:$0xf] %vm244_vm0, %v487_v54 }
 0x17f   : > { %808 = shalt.err (!%p805_p13)
}
 0x180   : > { %645 = dma.vmem_to_hbm [thread:$0]  (%p938_p9), %s504_s26, 64, %s506_s19, %s490_s27  }
 0x181 PF: > { %s517_s29 = sand.u32 1, %s847_s9   ;;  %p655_p0 = pnand %p621_p12, %p945_p11 }
 0x182   : > { %s518_s6 = scalar_lea.sflag [#allocation5], %s517_s29 }
 0x183   : > { %p656_p1 = pneg %p655_p0 }
 0x185   : > { %842 = dma.done.wait (%p656_p1), %s518_s6, 64  }
 0x186   : > { %844 = vsyncadd (%p656_p1), %s518_s6, 4294967232  ;;  %s21_s14 = sadd.s32 1, %s867_s14   ;;  %s1099_s9 = smov %s851_s10 }
 0x187   : > { %p18_p2 = scmp.ge.s32.totalorder %s21_s14, 4   ;;  %s1100_s10 = smov %s855_s11 }
 0x188   : > { %s1101_s11 = smov %s943_s23  ;;  %s1102_s12 = smov %s863_s13 }
 0x189   : > { %s1103_s13 = smov %s1105_s17  ;;  %20 = sbr.rel (!%p18_p2) target bundleno = 8 (0x8), region = 94 }
 0x18e   :  { %524 = vsyncpa [#allocation4], 1 }
 0x18f   :  { %526 = vsyncpa [#allocation4 + $0x1], 1 }
 0x190   :  { %527 = vsyncpa [#allocation7], 1 }
 0x191   :  { %529 = vsyncpa [#allocation7 + $0x1], 1 }
 0x192   :  { %530 = vsyncpa [#allocation5], 1 }
 0x193   :  { %532 = vsyncpa [#allocation5 + $0x1], 1 }

</bundles_post_ra>
